<compile_context>
chip_gen: v7x
topology: tpu7x:2x2x1
jax: 0.10.0
libtpu: 0.0.40
codegen_flags: <defaults>
</compile_context>

<pallas_src>
import jax
import jax.numpy as jnp
from jax.experimental import pallas as pl
from jax.experimental.pallas import tpu as pltpu

_LANE = 128
_SUBLANE = 8


def _round_up(n, m):
    return ((n + m - 1) // m) * m


def mlp_kernel(x_ref, w1_ref, b1_ref, w2_ref, b2_ref, w3_ref, b3_ref, o_ref):
    # Three MXU matmuls with fused bias-add + ReLU, all resident in VMEM.
    # Dot operands may be bf16; accumulation and elementwise math are f32.
    x = x_ref[...]
    h = jnp.dot(x, w1_ref[...], preferred_element_type=jnp.float32) + b1_ref[...]
    h = jnp.maximum(h, 0.0)
    h = jnp.dot(h.astype(w2_ref.dtype), w2_ref[...],
                preferred_element_type=jnp.float32) + b2_ref[...]
    h = jnp.maximum(h, 0.0)
    h = jnp.dot(h.astype(w3_ref.dtype), w3_ref[...],
                preferred_element_type=jnp.float32) + b3_ref[...]
    o_ref[...] = h.astype(o_ref.dtype)


def neural_net_forward(x, params, *, tile_b=None, use_bf16=True):
    """params = (w1, b1, w2, b2, w3, b3) with weights already (in, out)."""
    w1, b1, w2, b2, w3, b3 = params
    B, in_dim = x.shape
    out_dtype = x.dtype
    num_classes = w3.shape[1]

    # ---- lane-pad the final layer so the output store is a full-lane vst ----
    nc_pad = _round_up(num_classes, _LANE)
    if nc_pad != num_classes:
        w3 = jnp.pad(w3, ((0, 0), (0, nc_pad - num_classes)))
        b3 = jnp.pad(b3, ((0, 0), (0, nc_pad - num_classes)))

    # ---- bf16 operands for the MXU (f32 accumulate happens in the kernel) ----
    if use_bf16:
        x = x.astype(jnp.bfloat16)
        w1 = w1.astype(jnp.bfloat16)
        w2 = w2.astype(jnp.bfloat16)
        w3 = w3.astype(jnp.bfloat16)
    # biases stay f32 so bias-add/ReLU are native f32 VPU ops (v5e friendly)

    # ---- batch tile selection ----
    if tile_b is None:
        if B <= 1024:
            # single grid step: no per-step pipeline overhead, max MXU M-rows
            tile_b = _round_up(B, _SUBLANE)
        else:
            # keep >= 4 grid steps so both v7x TensorCores get work; cap keeps
            # VMEM footprint tiny (weights ~tens of KB, activations ~MBs max).
            tile_b = min(2048, _round_up(pl.cdiv(B, 4), _SUBLANE))
    tile_b = _round_up(tile_b, _SUBLANE)

    grid_b = pl.cdiv(B, tile_b)
    b_pad = grid_b * tile_b
    if b_pad != B:
        x = jnp.pad(x, ((0, b_pad - B), (0, 0)))

    full = lambda i: (0, 0)  # weights/biases: same whole-array block every step

    out_padded = pl.pallas_call(
        mlp_kernel,
        out_shape=jax.ShapeDtypeStruct((b_pad, nc_pad), out_dtype),
        grid_spec=pltpu.PrefetchScalarGridSpec(
            num_scalar_prefetch=0,
            grid=(grid_b,),
            in_specs=[
                pl.BlockSpec((tile_b, in_dim), lambda i: (i, 0)),  # x tile
                pl.BlockSpec(w1.shape, full),
                pl.BlockSpec(b1.shape, full),
                pl.BlockSpec(w2.shape, full),
                pl.BlockSpec(b2.shape, full),
                pl.BlockSpec(w3.shape, full),
                pl.BlockSpec(b3.shape, full),
            ],
            out_specs=pl.BlockSpec((tile_b, nc_pad), lambda i: (i, 0)),
        ),
        compiler_params=pltpu.CompilerParams(
            dimension_semantics=("parallel",),  # batch axis shards over TCs
        ),
    )(x, w1, b1, w2, b2, w3, b3)

    # strip batch padding and output lane padding
    return out_padded[:B, :num_classes]


def init_params(key, input_size, hidden_size, hidden_size2, num_classes,
                dtype=jnp.float32):
    """Deterministic init mirroring nn.Linear shapes (weights kept as (in, out))."""
    ks = jax.random.split(key, 6)

    def linear(kw, kb, fan_in, fan_out):
        bound = 1.0 / jnp.sqrt(fan_in)
        w = jax.random.uniform(kw, (fan_in, fan_out), dtype, -bound, bound)
        b = jax.random.uniform(kb, (1, fan_out), dtype, -bound, bound)
        return w, b

    w1, b1 = linear(ks[0], ks[1], input_size, hidden_size)
    w2, b2 = linear(ks[2], ks[3], hidden_size, hidden_size2)
    w3, b3 = linear(ks[4], ks[5], hidden_size2, num_classes)
    return (w1, b1, w2, b2, w3, b3)


def _jax_reference(x, params):
    w1, b1, w2, b2, w3, b3 = params
    h = jnp.maximum(x @ w1 + b1, 0.0)
    h = jnp.maximum(h @ w2 + b2, 0.0)
    return h @ w3 + b3


if __name__ == "__main__":
    key = jax.random.PRNGKey(0)
    k_x, k_p, k_x2 = jax.random.split(key, 3)

    batch = 16
    input_size, hidden_size, hidden_size2, num_classes = 32, 64, 32, 8

    x = jax.random.normal(k_x, (batch, input_size), jnp.float32)
    params = init_params(k_p, input_size, hidden_size, hidden_size2, num_classes)
    ref = _jax_reference(x, params)

    # default (bf16 MXU operands, f32 accumulation)
    out = jax.block_until_ready(neural_net_forward(x, params))
    assert out.shape == (batch, num_classes)
    assert jnp.allclose(out, ref, atol=5e-2, rtol=5e-2)

    # pure-f32 path matches the reference tightly
    out_f32 = jax.block_until_ready(neural_net_forward(x, params, use_bf16=False))
    assert jnp.allclose(out_f32, ref, atol=1e-5, rtol=1e-5)

    # awkward batch (not a multiple of 8) exercises the cdiv/padding path
    x_ragged = jax.random.normal(k_x2, (batch + 4 + 1, input_size), jnp.float32)
    ref_ragged = _jax_reference(x_ragged, params)
    out_ragged = jax.block_until_ready(neural_net_forward(x_ragged, params))
    assert out_ragged.shape == ref_ragged.shape
    assert jnp.allclose(out_ragged, ref_ragged, atol=5e-2, rtol=5e-2)

    print("KERNEL_OK")
</pallas_src>

<mosaic_0001>
module attributes {stable_mosaic.version = 11 : i64} {
  func.func @mlp_kernel(%arg0: i32, %arg1: memref<16x32xbf16, #tpu.memory_space<vmem>>, %arg2: memref<32x64xbf16, #tpu.memory_space<vmem>>, %arg3: memref<1x64xf32, #tpu.memory_space<vmem>>, %arg4: memref<64x32xbf16, #tpu.memory_space<vmem>>, %arg5: memref<1x32xf32, #tpu.memory_space<vmem>>, %arg6: memref<32x128xbf16, #tpu.memory_space<vmem>>, %arg7: memref<1x128xf32, #tpu.memory_space<vmem>>, %arg8: memref<16x128xf32, #tpu.memory_space<vmem>>) attributes {dimension_semantics = [#tpu.dimension_semantics<parallel>], iteration_bounds = array<i64: 1>, scalar_prefetch = 0 : i64, scratch_operands = 0 : i64, tpu.core_type = #tpu.core_type<tc>, window_params = [{transform_indices = @transform_0, window_bounds = array<i64: 16, 32>}, {pipeline_mode = #tpu.pipeline_mode<synchronous>, transform_indices = @transform_1, window_bounds = array<i64: 32, 64>}, {pipeline_mode = #tpu.pipeline_mode<synchronous>, transform_indices = @transform_2, window_bounds = array<i64: 1, 64>}, {pipeline_mode = #tpu.pipeline_mode<synchronous>, transform_indices = @transform_3, window_bounds = array<i64: 64, 32>}, {pipeline_mode = #tpu.pipeline_mode<synchronous>, transform_indices = @transform_4, window_bounds = array<i64: 1, 32>}, {pipeline_mode = #tpu.pipeline_mode<synchronous>, transform_indices = @transform_5, window_bounds = array<i64: 32, 128>}, {pipeline_mode = #tpu.pipeline_mode<synchronous>, transform_indices = @transform_6, window_bounds = array<i64: 1, 128>}, {transform_indices = @transform_7, window_bounds = array<i64: 16, 128>}]} {
    %c0 = arith.constant 0 : index
    %c0_0 = arith.constant 0 : index
    %0 = vector.load %arg1[%c0, %c0_0] : memref<16x32xbf16, #tpu.memory_space<vmem>>, vector<16x32xbf16>
    %c0_1 = arith.constant 0 : index
    %c0_2 = arith.constant 0 : index
    %1 = vector.load %arg2[%c0_1, %c0_2] : memref<32x64xbf16, #tpu.memory_space<vmem>>, vector<32x64xbf16>
    %cst = arith.constant dense<0.000000e+00> : vector<16x64xf32>
    %2 = tpu.matmul %0, %1, %cst {dimension_numbers = #tpu.dot_dimension_numbers<[1], [0], [0], [1], [0, 0, 1, 1], [], []>} : vector<16x32xbf16>, vector<32x64xbf16>, vector<16x64xf32> -> vector<16x64xf32>
    %c0_3 = arith.constant 0 : index
    %c0_4 = arith.constant 0 : index
    %3 = vector.load %arg3[%c0_3, %c0_4] : memref<1x64xf32, #tpu.memory_space<vmem>>, vector<1x64xf32>
    %4 = vector.broadcast %3 : vector<1x64xf32> to vector<16x64xf32>
    %5 = arith.addf %2, %4 : vector<16x64xf32>
    %cst_5 = arith.constant 0.000000e+00 : f32
    %6 = vector.broadcast %cst_5 : f32 to vector<16x64xf32>
    %7 = arith.maximumf %5, %6 : vector<16x64xf32>
    %8 = arith.truncf %7 : vector<16x64xf32> to vector<16x64xbf16>
    %c0_6 = arith.constant 0 : index
    %c0_7 = arith.constant 0 : index
    %9 = vector.load %arg4[%c0_6, %c0_7] : memref<64x32xbf16, #tpu.memory_space<vmem>>, vector<64x32xbf16>
    %cst_8 = arith.constant dense<0.000000e+00> : vector<16x32xf32>
    %10 = tpu.matmul %8, %9, %cst_8 {dimension_numbers = #tpu.dot_dimension_numbers<[1], [0], [0], [1], [0, 0, 1, 1], [], []>} : vector<16x64xbf16>, vector<64x32xbf16>, vector<16x32xf32> -> vector<16x32xf32>
    %c0_9 = arith.constant 0 : index
    %c0_10 = arith.constant 0 : index
    %11 = vector.load %arg5[%c0_9, %c0_10] : memref<1x32xf32, #tpu.memory_space<vmem>>, vector<1x32xf32>
    %12 = vector.broadcast %11 : vector<1x32xf32> to vector<16x32xf32>
    %13 = arith.addf %10, %12 : vector<16x32xf32>
    %cst_11 = arith.constant 0.000000e+00 : f32
    %14 = vector.broadcast %cst_11 : f32 to vector<16x32xf32>
    %15 = arith.maximumf %13, %14 : vector<16x32xf32>
    %16 = arith.truncf %15 : vector<16x32xf32> to vector<16x32xbf16>
    %c0_12 = arith.constant 0 : index
    %c0_13 = arith.constant 0 : index
    %17 = vector.load %arg6[%c0_12, %c0_13] : memref<32x128xbf16, #tpu.memory_space<vmem>>, vector<32x128xbf16>
    %cst_14 = arith.constant dense<0.000000e+00> : vector<16x128xf32>
    %18 = tpu.matmul %16, %17, %cst_14 {dimension_numbers = #tpu.dot_dimension_numbers<[1], [0], [0], [1], [0, 0, 1, 1], [], []>} : vector<16x32xbf16>, vector<32x128xbf16>, vector<16x128xf32> -> vector<16x128xf32>
    %c0_15 = arith.constant 0 : index
    %c0_16 = arith.constant 0 : index
    %19 = vector.load %arg7[%c0_15, %c0_16] : memref<1x128xf32, #tpu.memory_space<vmem>>, vector<1x128xf32>
    %20 = vector.broadcast %19 : vector<1x128xf32> to vector<16x128xf32>
    %21 = arith.addf %18, %20 : vector<16x128xf32>
    %c0_17 = arith.constant 0 : index
    %c0_18 = arith.constant 0 : index
    %22 = vector.load %arg8[%c0_17, %c0_18] : memref<16x128xf32, #tpu.memory_space<vmem>>, vector<16x128xf32>
    tpu.vector_store %arg8[%c0_17, %c0_18], %21 {strides = array<i32>} : memref<16x128xf32, #tpu.memory_space<vmem>>, vector<16x128xf32>,
    return
  }
  func.func @transform_0(%arg0: i32) -> (i32, i32) {
    %c0_i32 = arith.constant 0 : i32
    %c0_i32_0 = arith.constant 0 : i32
    return %arg0, %c0_i32 : i32, i32
  }
  func.func @transform_1(%arg0: i32) -> (i32, i32) {
    %c0_i32 = arith.constant 0 : i32
    %c0_i32_0 = arith.constant 0 : i32
    %c0_i32_1 = arith.constant 0 : i32
    return %c0_i32, %c0_i32_0 : i32, i32
  }
  func.func @transform_2(%arg0: i32) -> (i32, i32) {
    %c0_i32 = arith.constant 0 : i32
    %c0_i32_0 = arith.constant 0 : i32
    %c0_i32_1 = arith.constant 0 : i32
    return %c0_i32, %c0_i32_0 : i32, i32
  }
  func.func @transform_3(%arg0: i32) -> (i32, i32) {
    %c0_i32 = arith.constant 0 : i32
    %c0_i32_0 = arith.constant 0 : i32
    %c0_i32_1 = arith.constant 0 : i32
    return %c0_i32, %c0_i32_0 : i32, i32
  }
  func.func @transform_4(%arg0: i32) -> (i32, i32) {
    %c0_i32 = arith.constant 0 : i32
    %c0_i32_0 = arith.constant 0 : i32
    %c0_i32_1 = arith.constant 0 : i32
    return %c0_i32, %c0_i32_0 : i32, i32
  }
  func.func @transform_5(%arg0: i32) -> (i32, i32) {
    %c0_i32 = arith.constant 0 : i32
    %c0_i32_0 = arith.constant 0 : i32
    %c0_i32_1 = arith.constant 0 : i32
    return %c0_i32, %c0_i32_0 : i32, i32
  }
  func.func @transform_6(%arg0: i32) -> (i32, i32) {
    %c0_i32 = arith.constant 0 : i32
    %c0_i32_0 = arith.constant 0 : i32
    %c0_i32_1 = arith.constant 0 : i32
    return %c0_i32, %c0_i32_0 : i32, i32
  }
  func.func @transform_7(%arg0: i32) -> (i32, i32) {
    %c0_i32 = arith.constant 0 : i32
    %c0_i32_0 = arith.constant 0 : i32
    return %arg0, %c0_i32 : i32, i32
  }
}

</mosaic_0001>

<bundles_post_ra>
// kernel: tpu_custom_call.1
= control target key start
LH: loop header
LB: loop body
LE: loop exit
PB: predicated region body
PF: predicated region fallthrough
CT: control target
= control target key end

     0   :  { %v370_v1 = vmov 0.0   ;;  %vm371_vm0 = vmmov 0   ;;  %vm58_vm1 = vcmask 261120   ;;  %s468_s0 = inlined_call_operand.vmem [shape: bf16[16,32], index: 0, kind: input, shape index: {}]   ;;  %s469_s1 = inlined_call_operand.vmem [shape: bf16[32,64], index: 1, kind: input, shape index: {}]   ;;  %s470_s2 = inlined_call_operand.vmem [shape: f32[1,64], index: 2, kind: input, shape index: {}]   ;;  %s471_s3 = inlined_call_operand.vmem [shape: bf16[64,32], index: 3, kind: input, shape index: {}]   ;;  %s472_s4 = inlined_call_operand.vmem [shape: f32[1,32], index: 4, kind: input, shape index: {}]   ;;  %s473_s5 = inlined_call_operand.vmem [shape: bf16[32,128], index: 5, kind: input, shape index: {}]   ;;  %s474_s6 = inlined_call_operand.vmem [shape: f32[1,128], index: 6, kind: input, shape index: {}]   ;;  %s475_s7 = inlined_call_operand.hbm [shape: f32[16,128], index: 7, kind: output, shape index: {}]  }
   0x1   :  { %v337_v0 = vld [vmem:[%s469_s1] sm:$0xff]   ;;  %304 = vmatprep.subr.bf16.mxu0 %v370_v1  ;;  %312 = vmatprep.subr.bf16.mxu1 %v370_v1  ;;  %v338_v2 = vld [vmem:[%s469_s1 + $0x8] sm:$0xff]  }
   0x2   :  { %305 = vmatpush3.bf16.msra.mxu0 %v337_v0  ;;  %308 = vmatprep.mubr.msk.bf16.mxu0 %vm371_vm0, %v370_v1  ;;  %v340_v3 = vld [vmem:[%s471_s3] sm:$0xff]   ;;  %v341_v5 = vld [vmem:[%s471_s3 + $0x8] sm:$0xff]  }
   0x3   :  { %306 = vmatprep.subr.bf16.mxu0 %v370_v1  ;;  %320 = vmatprep.mubr.msk.bf16.mxu1 %vm371_vm0, %v370_v1  ;;  %v339_v4 = vld [vmem:[%s468_s0] sm:$0xff]  }
   0x4   :  { %313 = vmatpush3.bf16.msra.mxu1 %v340_v3 }
   0x5   :  { %314 = vmatprep.subr.bf16.mxu1 %v370_v1 }
   0x6   :  { %307 = vmatpush3.bf16.msra.mxu0 %v338_v2 }
   0x7   :  { %324 = vmatprep.subr.bf16.mxu0 %v370_v1 }
   0x8   :  { %12 = vsyncpa [#allocation3], 0  ;;  %315 = vmatpush3.bf16.msra.mxu1 %v341_v5  ;;  %v342_v6 = vld [vmem:[%s471_s3 + $0x10] sm:$0xff]   ;;  %v343_v7 = vld [vmem:[%s471_s3 + $0x18] sm:$0xff]   ;;  %vm145_vm2 = vcmask 523264  }
   0x9   :  { %309 = vmatmul.mubr.msk.bf16.vlgmr.msra.gmra.mrb[0].mxu0 %vm58_vm1, %v339_v4  ;;  %316 = vmatprep.subr.bf16.mxu1 %v370_v1  ;;  %v278_v8 = vld [vmem:[%s470_s2] ss:$0 sm:$0xff]  ;;  %v345_v19 = vld [vmem:[%s473_s5 + $0x8] sm:$0xff]  }
   0xa   :  { %328 = vmatprep.mubr.msk.bf16.mxu0 %vm371_vm0, %v370_v1  ;;  %v344_v18 = vld [vmem:[%s473_s5] sm:$0xff]   ;;  %s372_s5 = smov [#allocation2]  }
   0xb   :  { %325 = vmatpush3.bf16.msra.mxu0 %v344_v18  ;;  %v283_v20 = vld [vmem:[%s472_s4] ss:$0 sm:$0xff]  ;;  %s267_s21 = sshll.u32 %s372_s5, 4  ;;  %s268_s21 = int_to_ptr.vmem [resolvable:$true] %s267_s21 }
   0xc   :  { %317 = vmatpush3.bf16.msra.mxu1 %v342_v6  ;;  %326 = vmatprep.subr.bf16.mxu0 %v370_v1  ;;  %v289_v30 = vld [vmem:[%s474_s6] ss:$0 sm:$0xff]  ;;  %s346_s4 = scalar_lea.vmem %s268_s21, 256  ;;  %p351_p1 = scmp.lt.s32.totalorder %s268_s21, %s268_s21 }
   0xd   :  { %318 = vmatprep.subr.bf16.mxu1 %v370_v1  ;;  %p347_p0 = scmp.ne.s32.totalorder %s268_s21, %s346_s4  ;;  %p352_p2 = scmp.lt.s32.totalorder %s346_s4, %s346_s4 }
   0xf   :  { %327 = vmatpush3.bf16.msra.mxu0 %v345_v19  ;;  %p353_p3 = por %p352_p2, %p351_p1 }
  0x10   :  { %319 = vmatpush3.bf16.msra.mxu1 %v343_v7 }
  0x11   :  { %p354_p4 = pnand %p353_p3, %p347_p0 }
  0xdc   :  { %v96_v9 = vpop.f32.mrb[0].mxu0 }
  0xdd   :  { %v97_v10 = vadd.f32 %v278_v8, %v96_v9  ;;  %v310_v11 = vpop.f32.mrb[1].mxu0 }
  0xde   :  { %v99_v12 = vpop.f32.mrb[2].mxu0 }
  0xdf   :  { %v100_v13 = vadd.f32 %v278_v8, %v99_v12  ;;  %v311_v14 = vpop.f32.mrb[3].mxu0  ;;  %v103_v15 = vmax.f32 %v97_v10, 0.0 }
  0xe1   :  { %v104_v16 = vmax.f32 %v100_v13, 0.0 }
  0xe3   :  { %v105_v17 = vpack.c.bf16 %v104_v16, %v103_v15 }
  0xe5   :  { %321 = vmatmul.mubr.msk.bf16.vlgmr.msra.gmra.mrb[0].mxu1 %vm145_vm2, %v105_v17 }
 0x1b8   :  { %v183_v21 = vpop.f32.mrb[0].mxu1 }
 0x1b9   :  { %v184_v22 = vadd.f32 %v283_v20, %v183_v21  ;;  %v322_v23 = vpop.f32.mrb[1].mxu1 }
 0x1ba   :  { %v186_v24 = vpop.f32.mrb[2].mxu1 }
 0x1bb   :  { %v187_v25 = vadd.f32 %v283_v20, %v186_v24  ;;  %v323_v26 = vpop.f32.mrb[3].mxu1  ;;  %v190_v27 = vmax.f32 %v184_v22, 0.0 }
 0x1bd   :  { %v191_v28 = vmax.f32 %v187_v25, 0.0 }
 0x1bf   :  { %v192_v29 = vpack.c.bf16 %v191_v28, %v190_v27 }
 0x1c1   :  { %329 = vmatmul.mubr.msk.bf16.vlgmr.msra.gmra.mrb[4].mxu0 %vm58_vm1, %v192_v29 }
 0x294   :  { %v253_v31 = vpop.f32.mrb[4].mxu0 }
 0x295   :  { %v254_v32 = vadd.f32 %v289_v30, %v253_v31  ;;  %v330_v33 = vpop.f32.mrb[5].mxu0 }
 0x296   :  { %v256_v34 = vpop.f32.mrb[6].mxu0 }
 0x297   :  { %260 = vst [vmem:[#allocation2] sm:$0xff] %v254_v32  ;;  %v257_v35 = vadd.f32 %v289_v30, %v256_v34  ;;  %v331_v36 = vpop.f32.mrb[7].mxu0 }
 0x299   :  { %261 = vst [vmem:[#allocation2 + $0x8] sm:$0xff] %v257_v35 }
 0x29a   :  { %357 = shalt.err (!%p354_p4)
}
 0x29b   :  { %s358_s23 = scalar_lea.hbm %s475_s7, 256 }
 0x29c   :  { %p359_p5 = scmp.ne.s32.totalorder %s475_s7, %s358_s23  ;;  %p362_p6 = scmp.lt.u32.totalorder %s358_s23, %s475_s7 }
 0x29e   :  { %p364_p7 = pnand %p362_p6, %p359_p5 }
 0x2a0   :  { %367 = shalt.err (!%p364_p7)
}
 0x2a1   :  { %s373_s28 = smov 128   ;;  %s374_s29 = smov 8  }
 0x2a2   :  { %273 = dma.vmem_to_hbm [thread:$0]  %s268_s21, 256, %s475_s7, [#allocation3], %s373_s28, %s373_s28, %s374_s29  }
 0x2a3   :  { %368 = dma.done.wait [#allocation3], 256  }
 0x2a4   :  { %369 = vsyncadd [#allocation3], 4294967040 }
 0x2a5   :  { %277 = vsyncpa [#allocation3], 1 }

</bundles_post_ra>
